<compile_context>
chip_gen: v6e
topology: v6e:2x2x1
jax: 0.10.0
libtpu: 0.0.40
codegen_flags: <defaults>
</compile_context>

<pallas_src>
import jax
import jax.numpy as jnp
from jax.experimental import pallas as pl
from jax.experimental.pallas import tpu as pltpu


def _round_up(x, m):
    return ((x + m - 1) // m) * m


def _vmem_capacity_bytes():
    """Per-TensorCore VMEM capacity; conservative fallback = v7x's 64 MiB/TC."""
    try:
        return int(pltpu.get_tpu_info().vmem_capacity_bytes)
    except Exception:  # trace-time query unavailable -> most conservative chip
        return 64 * 1024 * 1024


# ---------------------------------------------------------------------------
# Kernel
# ---------------------------------------------------------------------------
def mapnet_kernel(x_ref, w1_ref, w2_ref, o_ref, acc_ref):
    """One (row-tile, mid-chunk) grid step of   out = relu(x @ W1) @ W2 + x.

    Grid axis 0 tiles rows ("parallel"); grid axis 1 chunks the mid dim M
    ("arbitrary" reduction): each step consumes W1[:, k*tkm:(k+1)*tkm] and
    W2[k*tkm:(k+1)*tkm, :], so the live f32 intermediate is only (tm, tkm) and
    the same loop structure streams the weights when they do not fit in VMEM.
    Dots consume operands in their native dtype (bf16 feeds the MXU directly);
    the accumulator is f32, seeded with the residual on the first chunk and
    written out on the last.
    """
    k = pl.program_id(1)

    @pl.when(k == 0)
    def _():
        acc_ref[...] = x_ref[...].astype(jnp.float32)      # residual seed

    h = jnp.dot(x_ref[...], w1_ref[...], preferred_element_type=jnp.float32)
    h = jnp.maximum(h, 0.0)
    acc_ref[...] += jnp.dot(h.astype(w2_ref.dtype), w2_ref[...],
                            preferred_element_type=jnp.float32)

    @pl.when(k == pl.num_programs(1) - 1)
    def _():
        o_ref[...] = acc_ref[...].astype(o_ref.dtype)


# ---------------------------------------------------------------------------
# Wrappers
# ---------------------------------------------------------------------------
def prepare_mapnet_weights(w1, w2, compute_dtype=jnp.bfloat16):
    """Cast the MapNet MLP weights ONCE at init (hoisted out of the per-call
    path).  bf16 operands are the production default: f32 operands cost ~3x on
    the MXU and 2x weight VMEM on v5e/v6e/v7x.  Weights stored (in, out)."""
    H, M = w1.shape
    assert w2.shape == (M, H)
    if compute_dtype is not None:
        w1 = w1.astype(compute_dtype)
        w2 = w2.astype(compute_dtype)
    return w1, w2


def _choose_tiles(rows, H, M, x_itemsize, w_itemsize, out_itemsize, tm):
    """Pick (row tile, mid chunk, vmem limit) from the per-core VMEM budget."""
    # Sublane multiple for the compute dtype (f32: 8, bf16: 16, int8/fp8: 32).
    sub = max(8, 32 // x_itemsize)
    if tm is None:
        if rows >= 256:
            # >=2 row tiles so v7x's two TensorCores both get work; cap at 512.
            tm = min(512, _round_up((rows + 1) // 2, 128))
        else:
            tm = _round_up(rows, sub)

    cap = _vmem_capacity_bytes()
    # Per-row-tile activation footprint (double-buffered in/out + f32 acc).
    act_bytes = 2 * tm * H * x_itemsize + 2 * tm * H * out_itemsize + tm * H * 4
    budget = int(0.70 * cap) - act_bytes

    full_w_bytes = 4 * H * M * w_itemsize          # W1 + W2, double-buffered
    if M % 128 != 0 or full_w_bytes <= budget:
        tkm = M                                    # weights fully resident
    else:
        # Stream the mid dim in lane-aligned chunks that divide M exactly
        # (M % 128 == 0 here, so 128 is always a valid floor).
        tkm = 512
        while tkm > 128 and (M % tkm != 0 or 4 * H * tkm * w_itemsize > budget):
            tkm //= 2

    footprint = (2 * tm * H * x_itemsize +          # activation double-buffer
                 2 * tm * H * out_itemsize +        # output double-buffer
                 4 * H * tkm * w_itemsize +         # W1/W2 chunk double-buffer
                 tm * H * 4)                        # f32 accumulator scratch
    # Computed footprint + headroom for Mosaic internal scratch; never request
    # the full physical per-TC VMEM (v7x: 64 MiB/TC).
    vmem_limit = max(footprint + 4 * 1024 * 1024,
                     min(footprint + 16 * 1024 * 1024, int(0.875 * cap)))
    return tm, tkm, vmem_limit


def mapnet_forward(doc_rep, w1, w2, *, tm=None):
    """doc_rep: (B, S, H). Returns doc_plug = MLP(doc_rep) + doc_rep, same
    shape/dtype.  Compute dtype == weight dtype (cast weights once via
    prepare_mapnet_weights); activations are cast per call only if they differ.
    """
    B, S, H = doc_rep.shape
    Hw, M = w1.shape
    assert Hw == H and w2.shape == (M, H)
    out_dtype = doc_rep.dtype

    compute_dtype = w1.dtype
    if doc_rep.dtype != compute_dtype:
        doc_rep = doc_rep.astype(compute_dtype)

    rows = B * S
    x2d = doc_rep.reshape(rows, H)

    x_itemsize = jnp.dtype(compute_dtype).itemsize
    w_itemsize = jnp.dtype(w1.dtype).itemsize
    out_itemsize = jnp.dtype(out_dtype).itemsize
    tm, tkm, vmem_limit = _choose_tiles(rows, H, M, x_itemsize, w_itemsize,
                                        out_itemsize, tm)

    grid = (pl.cdiv(rows, tm), M // tkm)

    cost = pl.CostEstimate(
        flops=4 * rows * H * M,
        transcendentals=0,
        bytes_accessed=rows * H * (x_itemsize + out_itemsize)
        + 2 * H * M * w_itemsize,
    )

    out2d = pl.pallas_call(
        mapnet_kernel,
        out_shape=jax.ShapeDtypeStruct((rows, H), out_dtype),
        grid_spec=pltpu.PrefetchScalarGridSpec(
            num_scalar_prefetch=0,
            grid=grid,
            in_specs=[
                pl.BlockSpec((tm, H), lambda i, k: (i, 0)),    # activation rows
                pl.BlockSpec((H, tkm), lambda i, k: (0, k)),   # W1 mid-chunk
                pl.BlockSpec((tkm, H), lambda i, k: (k, 0)),   # W2 mid-chunk
            ],
            out_specs=pl.BlockSpec((tm, H), lambda i, k: (i, 0)),
            scratch_shapes=[pltpu.VMEM((tm, H), jnp.float32)],
        ),
        compiler_params=pltpu.CompilerParams(
            dimension_semantics=("parallel", "arbitrary"),
            vmem_limit_bytes=vmem_limit,
        ),
        cost_estimate=cost,
    )(x2d, w1, w2)

    return out2d.reshape(B, S, H)


def make_mapnet_params(hidden_size, mid_ratio=2, init_std=0.02, seed=0):
    """Deterministic init matching MapNet.__init__:
    MLP(H, H, dim_mid=int(H*mid_ratio), init_std=0.02, bias=False)."""
    mid = int(hidden_size * mid_ratio)
    k1, k2 = jax.random.split(jax.random.PRNGKey(seed))
    # stored as (in, out); torch Linear would store (out, in)
    w1 = (init_std * jax.random.normal(k1, (hidden_size, mid))).astype(jnp.float32)
    w2 = (init_std * jax.random.normal(k2, (mid, hidden_size))).astype(jnp.float32)
    return w1, w2


def generate_doc_plug(last_hidden, attention_mask, w1, w2):
    """HyperPlugD.generate_doc_plug given the (frozen) encoder output
    `last_hidden`.  Returns (doc_plug, last_hidden); attention_mask is accepted
    but unused, which matches MapNet.forward exactly (it ignores the mask).
    """
    # TODO(synk): DeltaT5OnlyEnc (pretrained T5 encoder) producing last_hidden
    # is external and not translated; only the MapNet step runs in Pallas.
    doc_plug = mapnet_forward(last_hidden, w1, w2)
    return doc_plug, last_hidden


def mapnet_ref(doc_rep, w1, w2):
    h = jnp.maximum(doc_rep @ w1, 0.0)
    return h @ w2 + doc_rep


if __name__ == "__main__":
    # Small shapes consistent with the module: batch=2, ctx seq=8, hidden=32.
    batch, seq, hidden = 2, 8, 32
    key = jax.random.PRNGKey(0)
    k_h, _ = jax.random.split(key)

    # Stand-in for DeltaT5OnlyEnc last hidden state (real encoder is external).
    last_hidden = jax.random.normal(k_h, (batch, seq, hidden), dtype=jnp.float32)
    attention_mask = jnp.ones((batch, seq), dtype=jnp.int32)

    w1_f32, w2_f32 = make_mapnet_params(hidden, mid_ratio=2, init_std=0.02, seed=0)
    ref = mapnet_ref(last_hidden, w1_f32, w2_f32)

    # 1) Production path: bf16 operands (weights cast ONCE at init), f32 accumulate.
    w1_bf16, w2_bf16 = prepare_mapnet_weights(w1_f32, w2_f32, jnp.bfloat16)
    doc_plug, _ = generate_doc_plug(last_hidden, attention_mask, w1_bf16, w2_bf16)
    doc_plug = jax.block_until_ready(doc_plug)
    assert doc_plug.shape == (batch, seq, hidden)
    assert doc_plug.dtype == last_hidden.dtype
    assert jnp.allclose(doc_plug, ref, atol=5e-2, rtol=5e-2)

    # 2) f32-operand path (matches the PyTorch reference numerics tightly).
    doc_plug_f32, _ = generate_doc_plug(last_hidden, attention_mask, w1_f32, w2_f32)
    doc_plug_f32 = jax.block_until_ready(doc_plug_f32)
    assert jnp.allclose(doc_plug_f32, ref, atol=1e-5, rtol=1e-5)

    print("KERNEL_OK")
</pallas_src>

<mosaic_0001>
module attributes {stable_mosaic.version = 11 : i64} {
  func.func @mapnet_kernel(%arg0: i32, %arg1: i32, %arg2: memref<16x32xbf16, #tpu.memory_space<vmem>>, %arg3: memref<32x64xbf16, #tpu.memory_space<vmem>>, %arg4: memref<64x32xbf16, #tpu.memory_space<vmem>>, %arg5: memref<16x32xf32, #tpu.memory_space<vmem>>, %arg6: memref<16x32xf32, #tpu.memory_space<vmem>>) attributes {dimension_semantics = [#tpu.dimension_semantics<parallel>, #tpu.dimension_semantics<arbitrary>], iteration_bounds = array<i64: 1, 1>, scalar_prefetch = 0 : i64, scratch_operands = 1 : i64, tpu.core_type = #tpu.core_type<tc>, window_params = [{transform_indices = @transform_0, window_bounds = array<i64: 16, 32>}, {transform_indices = @transform_1, window_bounds = array<i64: 32, 64>}, {transform_indices = @transform_2, window_bounds = array<i64: 64, 32>}, {transform_indices = @transform_3, window_bounds = array<i64: 16, 32>}]} {
    %c0_i32 = arith.constant 0 : i32
    %0 = arith.cmpi eq, %arg1, %c0_i32 : i32
    %1 = arith.extui %0 : i1 to i32
    %c0_i32_0 = arith.constant 0 : i32
    %2 = arith.cmpi ne, %1, %c0_i32_0 : i32
    scf.if %2 {
      %c0_14 = arith.constant 0 : index
      %c0_15 = arith.constant 0 : index
      %17 = vector.load %arg2[%c0_14, %c0_15] : memref<16x32xbf16, #tpu.memory_space<vmem>>, vector<16x32xbf16>
      %18 = arith.extf %17 : vector<16x32xbf16> to vector<16x32xf32>
      %c0_16 = arith.constant 0 : index
      %c0_17 = arith.constant 0 : index
      %19 = vector.load %arg6[%c0_16, %c0_17] : memref<16x32xf32, #tpu.memory_space<vmem>>, vector<16x32xf32>
      tpu.vector_store %arg6[%c0_16, %c0_17], %18 {strides = array<i32>} : memref<16x32xf32, #tpu.memory_space<vmem>>, vector<16x32xf32>,
    } else {
    }
    %c0 = arith.constant 0 : index
    %c0_1 = arith.constant 0 : index
    %3 = vector.load %arg2[%c0, %c0_1] : memref<16x32xbf16, #tpu.memory_space<vmem>>, vector<16x32xbf16>
    %c0_2 = arith.constant 0 : index
    %c0_3 = arith.constant 0 : index
    %4 = vector.load %arg3[%c0_2, %c0_3] : memref<32x64xbf16, #tpu.memory_space<vmem>>, vector<32x64xbf16>
    %cst = arith.constant dense<0.000000e+00> : vector<16x64xf32>
    %5 = tpu.matmul %3, %4, %cst {dimension_numbers = #tpu.dot_dimension_numbers<[1], [0], [0], [1], [0, 0, 1, 1], [], []>} : vector<16x32xbf16>, vector<32x64xbf16>, vector<16x64xf32> -> vector<16x64xf32>
    %cst_4 = arith.constant 0.000000e+00 : f32
    %6 = vector.broadcast %cst_4 : f32 to vector<16x64xf32>
    %7 = arith.maximumf %5, %6 : vector<16x64xf32>
    %c0_5 = arith.constant 0 : index
    %c0_6 = arith.constant 0 : index
    %8 = vector.load %arg6[%c0_5, %c0_6] : memref<16x32xf32, #tpu.memory_space<vmem>>, vector<16x32xf32>
    %9 = arith.truncf %7 : vector<16x64xf32> to vector<16x64xbf16>
    %c0_7 = arith.constant 0 : index
    %c0_8 = arith.constant 0 : index
    %10 = vector.load %arg4[%c0_7, %c0_8] : memref<64x32xbf16, #tpu.memory_space<vmem>>, vector<64x32xbf16>
    %cst_9 = arith.constant dense<0.000000e+00> : vector<16x32xf32>
    %11 = tpu.matmul %9, %10, %cst_9 {dimension_numbers = #tpu.dot_dimension_numbers<[1], [0], [0], [1], [0, 0, 1, 1], [], []>} : vector<16x64xbf16>, vector<64x32xbf16>, vector<16x32xf32> -> vector<16x32xf32>
    %12 = arith.addf %8, %11 : vector<16x32xf32>
    %c0_10 = arith.constant 0 : index
    %c0_11 = arith.constant 0 : index
    %13 = vector.load %arg6[%c0_10, %c0_11] : memref<16x32xf32, #tpu.memory_space<vmem>>, vector<16x32xf32>
    tpu.vector_store %arg6[%c0_10, %c0_11], %12 {strides = array<i32>} : memref<16x32xf32, #tpu.memory_space<vmem>>, vector<16x32xf32>,
    %c0_i32_12 = arith.constant 0 : i32
    %14 = arith.cmpi eq, %arg1, %c0_i32_12 : i32
    %15 = arith.extui %14 : i1 to i32
    %c0_i32_13 = arith.constant 0 : i32
    %16 = arith.cmpi ne, %15, %c0_i32_13 : i32
    scf.if %16 {
      %c0_14 = arith.constant 0 : index
      %c0_15 = arith.constant 0 : index
      %17 = vector.load %arg6[%c0_14, %c0_15] : memref<16x32xf32, #tpu.memory_space<vmem>>, vector<16x32xf32>
      %c0_16 = arith.constant 0 : index
      %c0_17 = arith.constant 0 : index
      %18 = vector.load %arg5[%c0_16, %c0_17] : memref<16x32xf32, #tpu.memory_space<vmem>>, vector<16x32xf32>
      tpu.vector_store %arg5[%c0_16, %c0_17], %17 {strides = array<i32>} : memref<16x32xf32, #tpu.memory_space<vmem>>, vector<16x32xf32>,
    } else {
    }
    return
  }
  func.func @transform_0(%arg0: i32, %arg1: i32) -> (i32, i32) {
    %c0_i32 = arith.constant 0 : i32
    %c0_i32_0 = arith.constant 0 : i32
    return %arg0, %c0_i32 : i32, i32
  }
  func.func @transform_1(%arg0: i32, %arg1: i32) -> (i32, i32) {
    %c0_i32 = arith.constant 0 : i32
    %c0_i32_0 = arith.constant 0 : i32
    return %c0_i32, %arg1 : i32, i32
  }
  func.func @transform_2(%arg0: i32, %arg1: i32) -> (i32, i32) {
    %c0_i32 = arith.constant 0 : i32
    %c0_i32_0 = arith.constant 0 : i32
    return %arg1, %c0_i32 : i32, i32
  }
  func.func @transform_3(%arg0: i32, %arg1: i32) -> (i32, i32) {
    %c0_i32 = arith.constant 0 : i32
    %c0_i32_0 = arith.constant 0 : i32
    return %arg0, %c0_i32 : i32, i32
  }
}

</mosaic_0001>

<bundles_post_ra>
// kernel: tpu_custom_call.1
= control target key start
LH: loop header
LB: loop body
LE: loop exit
PB: predicated region body
PF: predicated region fallthrough
CT: control target
= control target key end

     0   :  { %v279_v1 = vmov 0.0   ;;  %vm280_vm0 = vmmov 0   ;;  %vm24_vm1 = vcmask 261120   ;;  %s338_s0 = inlined_call_operand.vmem [shape: bf16[16,32], index: 0, kind: input, shape index: {}]   ;;  %s339_s1 = inlined_call_operand.vmem [shape: bf16[32,64], index: 1, kind: input, shape index: {}]   ;;  %s340_s2 = inlined_call_operand.vmem [shape: bf16[64,32], index: 2, kind: input, shape index: {}]   ;;  %s341_s3 = inlined_call_operand.hbm [shape: f32[16,32], index: 3, kind: output, shape index: {}]  }
   0x1   :  { %v250_v0 = vld [vmem:[%s339_s1 + $0x8] sm:$0xff]   ;;  %225 = vmatprep.subr.bf16.mxu0 %v279_v1  ;;  %233 = vmatprep.subr.bf16.mxu1 %v279_v1  ;;  %v251_v2 = vld [vmem:[%s339_s1] sm:$0xff]   ;;  %v253_v4 = vld [vmem:[%s340_s2 + $0x18] sm:$0xff]  }
   0x2   :  { %226 = vmatpush3.bf16.msra.mxu0 %v250_v0  ;;  %229 = vmatprep.mubr.msk.bf16.mxu0 %vm280_vm0, %v279_v1  ;;  %v252_v3 = vld [vmem:[%s338_s0] sm:$0xff]   ;;  %v254_v5 = vld [vmem:[%s340_s2 + $0x10] sm:$0xff]  }
   0x3   :  { %227 = vmatprep.subr.bf16.mxu0 %v279_v1  ;;  %241 = vmatprep.mubr.msk.bf16.mxu1 %vm280_vm0, %v279_v1 }
   0x4   :  { %234 = vmatpush3.bf16.msra.mxu1 %v253_v4 }
   0x5   :  { %235 = vmatprep.subr.bf16.mxu1 %v279_v1 }
   0x6   :  { %228 = vmatpush3.bf16.msra.mxu0 %v251_v2 }
   0x7   :  { %8 = vsyncpa [#allocation4], 0  ;;  %v255_v6 = vld [vmem:[%s340_s2 + $0x8] sm:$0xff]   ;;  %v256_v7 = vld [vmem:[%s340_s2] sm:$0xff]   ;;  %vm132_vm2 = vcmask 523264  }
   0x8   :  { %236 = vmatpush3.bf16.msra.mxu1 %v254_v5  ;;  %v214_v8 = vld [vmem:[%s338_s0] sm:$0xff]   ;;  %s281_s0 = smov [#allocation3]  }
   0x9   :  { %230 = vmatmul.mubr.msk.bf16.vlgmr.msra.gmra.mxu0 %vm24_vm1, %v252_v3  ;;  %237 = vmatprep.subr.bf16.mxu1 %v279_v1  ;;  %v215_v9 = vunpack.c.l.bf16 %v214_v8  ;;  %v216_v17 = vunpack.c.h.bf16 %v214_v8  ;;  %s193_s2 = sshll.u32 %s281_s0, 4  ;;  %s194_s2 = int_to_ptr.vmem [resolvable:$true] %s193_s2 }
   0xa   :  { %s257_s27 = scalar_lea.vmem %s194_s2, 256  ;;  %p262_p1 = scmp.lt.s32.totalorder %s194_s2, %s194_s2 }
   0xb   :  { %25 = vst.msk [vmem:[#allocation2] sm:$0xff] %vm24_vm1, %v215_v9  ;;  %26 = vst.msk [vmem:[#allocation2 + $0x8] sm:$0xff] %vm24_vm1, %v216_v17  ;;  %p258_p0 = scmp.ne.s32.totalorder %s194_s2, %s257_s27  ;;  %p263_p2 = scmp.lt.s32.totalorder %s257_s27, %s257_s27 }
   0xc   :  { %238 = vmatpush3.bf16.msra.mxu1 %v255_v6 }
   0xd   :  { %239 = vmatprep.subr.bf16.mxu1 %v279_v1  ;;  %p264_p3 = por %p263_p2, %p262_p1 }
   0xf   :  { %p265_p4 = pnand %p264_p3, %p258_p0 }
  0x10   :  { %240 = vmatpush3.bf16.msra.mxu1 %v256_v7 }
  0x12   :  { %v97_v18 = vld [vmem:[#allocation2] sm:$0xff]  ;;  %v98_v22 = vld [vmem:[#allocation2 + $0x8] sm:$0xff] }
  0xc9   :  { %v88_v10 = vpop.f32.mrf.mxu0 }
  0xca   :  { %v95_v13 = vmax.f32 %v88_v10, 0.0 }
  0xcb   :  { %v231_v11 = vpop.f32.mrf.mxu0 }
  0xcd   :  { %v91_v12 = vpop.f32.mrf.mxu0 }
  0xce   :  { %v96_v14 = vmax.f32 %v91_v12, 0.0 }
  0xcf   :  { %v232_v15 = vpop.f32.mrf.mxu0 }
  0xd0   :  { %v99_v16 = vpack.c.bf16 %v96_v14, %v95_v13 }
  0xd2   :  { %242 = vmatmul.mubr.msk.bf16.vlgmr.msra.gmra.mxu1 %vm132_vm2, %v99_v16 }
 0x192   :  { %v170_v19 = vpop.f32.mrf.mxu1 }
 0x193   :  { %v177_v20 = vadd.f32 %v170_v19, %v97_v18 }
 0x194   :  { %v243_v21 = vpop.f32.mrf.mxu1 }
 0x195   :  { %179 = vst.msk [vmem:[#allocation2] sm:$0xff] %vm24_vm1, %v177_v20 }
 0x196   :  { %v173_v23 = vpop.f32.mrf.mxu1 }
 0x197   :  { %v178_v24 = vadd.f32 %v173_v23, %v98_v22 }
 0x198   :  { %v244_v25 = vpop.f32.mrf.mxu1 }
 0x199   :  { %180 = vst.msk [vmem:[#allocation2 + $0x8] sm:$0xff] %vm24_vm1, %v178_v24 }
 0x19c   :  { %v184_v26 = vld [vmem:[#allocation2] sm:$0xff] }
 0x19d   :  { %186 = vst.msk [vmem:[#allocation3] sm:$0xff] %vm24_vm1, %v184_v26 }
 0x1a0   :  { %v185_v27 = vld [vmem:[#allocation2 + $0x8] sm:$0xff] }
 0x1a1   :  { %187 = vst.msk [vmem:[#allocation3 + $0x8] sm:$0xff] %vm24_vm1, %v185_v27 }
 0x1a2   :  { %268 = shalt.err (!%p265_p4)
}
 0x1a3   :  { %s282_s28 = smov 128   ;;  %s283_s29 = smov 8  }
 0x1a4   :  { %199 = dma.vmem_to_hbm [thread:$0]  %s194_s2, 256, %s341_s3, [#allocation4], %s282_s28, %s282_s28, %s283_s29  }
 0x1a5   :  { %277 = dma.done.wait [#allocation4], 256  }
 0x1a6   :  { %278 = vsyncadd [#allocation4], 4294967040 }
 0x1a7   :  { %203 = vsyncpa [#allocation4], 1 }

</bundles_post_ra>
